<compile_context>
chip_gen: v7x
topology: tpu7x:2x2x1
jax: 0.10.0
libtpu: 0.0.40
codegen_flags: <defaults>
</compile_context>

<pallas_src>
import functools
import math

import jax
import jax.numpy as jnp
from jax.experimental import pallas as pl
from jax.experimental.pallas import tpu as pltpu


def _round_up(x, m):
    return ((x + m - 1) // m) * m


def _gelu(x, approximate: str):
    # Matches torch.nn.functional.gelu semantics.
    if approximate == "tanh":
        # tanh lowers to the EUP (its own VLIW slot) -> overlaps with the MXU.
        c = math.sqrt(2.0 / math.pi)
        return 0.5 * x * (1.0 + jnp.tanh(c * (x + 0.044715 * x * x * x)))
    # exact (erf-based) GELU
    return 0.5 * x * (1.0 + jax.lax.erf(x * (1.0 / math.sqrt(2.0))))


# ----------------------------------------------------------------------------
# Kernels
# ----------------------------------------------------------------------------

def _phi_mlp_kernel_acc(approximate, x_ref, w1_ref, b1_ref, w2_ref, b2_ref,
                        o_ref, acc_ref):
    """Multi-step reduction over the intermediate dim (grid axis 1)."""
    k = pl.program_id(1)

    @pl.when(k == 0)
    def _():
        acc_ref[...] = jnp.zeros_like(acc_ref)

    # fc1 slice: [tm, H] @ [H, ti] + [1, ti]
    h = jnp.dot(x_ref[...], w1_ref[...], preferred_element_type=jnp.float32)
    h = h + b1_ref[...].astype(jnp.float32)
    h = _gelu(h, approximate)
    # fc2 partial: [tm, ti] @ [ti, H] accumulated in f32
    acc_ref[...] += jnp.dot(h.astype(w2_ref.dtype), w2_ref[...],
                            preferred_element_type=jnp.float32)

    @pl.when(k == pl.num_programs(1) - 1)
    def _():
        o_ref[...] = (acc_ref[...] + b2_ref[...].astype(jnp.float32)
                      ).astype(o_ref.dtype)


def _phi_mlp_kernel_single(approximate, x_ref, w1_ref, b1_ref, w2_ref, b2_ref,
                           o_ref):
    """Single reduction step: no accumulator scratch, write output directly."""
    h = jnp.dot(x_ref[...], w1_ref[...], preferred_element_type=jnp.float32)
    h = h + b1_ref[...].astype(jnp.float32)
    h = _gelu(h, approximate)
    out = jnp.dot(h.astype(w2_ref.dtype), w2_ref[...],
                  preferred_element_type=jnp.float32)
    o_ref[...] = (out + b2_ref[...].astype(jnp.float32)).astype(o_ref.dtype)


# ----------------------------------------------------------------------------
# Per-chip tile selection
# ----------------------------------------------------------------------------

def _chip_defaults():
    """(tm, ti, vmem_budget_bytes) per TPU generation."""
    kind = ""
    try:
        kind = jax.devices()[0].device_kind.lower()
    except Exception:  # pragma: no cover - defensive
        pass
    if "v7" in kind:
        # 64 MiB VMEM per TC; 3.2 TB/s HBM means tm=512 is near compute-bound.
        return 512, 512, 48 << 20
    if "v6" in kind:
        # 128 MiB VMEM, 1.35 TB/s HBM: need big token tiles + big ti to flip
        # from weight-streaming-bound to MXU-bound; raise scoped VMEM limit.
        return 1024, 1024, 100 << 20
    if "v5" in kind and ("lite" in kind or "v5e" in kind):
        # 197 TF/s: already ~compute-bound at tm=512; bigger tiles only cost VMEM.
        return 512, 512, 100 << 20
    # Unknown / older chips: conservative (fits 64 MiB-class VMEM).
    return 512, 512, 48 << 20


def _select_tiles(T, H, I, x_bytes, w_bytes, sub, tm_req, ti_req, vmem_budget):
    """Pick (tm, ti) respecting tiling constraints and the VMEM budget."""
    tm_eff = max(sub, min(_round_up(tm_req, sub), _round_up(T, sub)))
    ti_eff = min(ti_req, I)
    if ti_eff < I:
        ti_eff = _round_up(ti_eff, 128)
        if ti_eff >= I:
            ti_eff = I

    def usage(tm_e, ti_e):
        nk = _round_up(I, ti_e) // ti_e
        u = 4 * tm_e * H * x_bytes              # x + out tiles, double-buffered
        if nk > 1:
            u += tm_e * H * 4                   # resident f32 accumulator
        u += 4 * ti_e * H * w_bytes             # w1 + w2 tiles, double-buffered
        u += 2 * (ti_e + H) * w_bytes           # biases (tiny)
        return u

    # Shrink the token tile first, then the intermediate tile, until it fits.
    while usage(tm_eff, ti_eff) > vmem_budget and tm_eff > sub:
        tm_eff = max(sub, _round_up(tm_eff // 2, sub))
    while usage(tm_eff, ti_eff) > vmem_budget and ti_eff > 128:
        ti_eff = max(128, _round_up(ti_eff // 2, 128))

    return tm_eff, ti_eff


# ----------------------------------------------------------------------------
# Wrapper
# ----------------------------------------------------------------------------

def phi_mlp(hidden_states, w1, b1, w2, b2, *, hidden_act="gelu_new",
            tm=None, ti=None, vmem_limit_bytes=None):
    """Fused PhiMLP forward.

    hidden_states: [T, H]
    w1: [H, I], b1: [I]
    w2: [I, H], b2: [H]
    returns: [T, H]

    tm / ti / vmem_limit_bytes default to a per-chip table (v5e: 512/512,
    v6e: 1024/1024 + ~100 MiB scoped VMEM, v7x: 512/512 + ~48 MiB).
    """
    T, H = hidden_states.shape
    I = w1.shape[1]
    assert w1.shape == (H, I) and w2.shape == (I, H)
    assert b1.shape == (I,) and b2.shape == (H,)

    # Matches the PyTorch lambda in the module spec exactly: tanh approx only
    # for gelu_fast / gelu_pytorch_tanh, exact (erf) GELU otherwise (incl.
    # gelu_new -- the module's lambda passes approximate='none' for it).
    approximate = "tanh" if hidden_act in ("gelu_fast", "gelu_pytorch_tanh") else "none"

    x_itemsize = jnp.dtype(hidden_states.dtype).itemsize
    w_itemsize = jnp.dtype(w1.dtype).itemsize
    # Sublane multiple for the token (second-to-last) block dim by dtype width.
    sub = {4: 8, 2: 16, 1: 32}.get(x_itemsize, 8)

    tm_def, ti_def, vmem_def = _chip_defaults()
    tm_req = tm_def if tm is None else tm
    ti_req = ti_def if ti is None else ti
    vmem_budget = vmem_def if vmem_limit_bytes is None else int(vmem_limit_bytes)

    tm_eff, ti_eff = _select_tiles(T, H, I, x_itemsize, w_itemsize, sub,
                                   tm_req, ti_req, vmem_budget)

    T_pad = _round_up(T, tm_eff)
    I_pad = _round_up(I, ti_eff)
    n_k = I_pad // ti_eff

    # Pad ragged dims with zeros (zero rows of x / zero cols of w1 & b1 / zero
    # rows of w2 contribute exactly 0 to the output; GELU(0+b) hits zero w2 rows).
    x = hidden_states
    if T_pad != T:
        x = jnp.pad(x, ((0, T_pad - T), (0, 0)))
    if I_pad != I:
        w1 = jnp.pad(w1, ((0, 0), (0, I_pad - I)))
        b1 = jnp.pad(b1, ((0, I_pad - I),))
        w2 = jnp.pad(w2, ((0, I_pad - I), (0, 0)))

    b1_2d = b1.reshape(1, I_pad)
    b2_2d = b2.reshape(1, H)

    # Advisory cost estimate: weights are re-streamed once per token tile.
    n_tok_tiles = T_pad // tm_eff
    cost = pl.CostEstimate(
        flops=4 * T_pad * H * I_pad,
        transcendentals=T_pad * I_pad,
        bytes_accessed=(n_tok_tiles * (2 * H * I_pad + I_pad + H) * w_itemsize
                        + 2 * T_pad * H * x_itemsize),
    )

    cparams = dict(vmem_limit_bytes=int(vmem_budget))

    if n_k == 1:
        # Single reduction step: no accumulator scratch, 1-D grid.
        grid = (n_tok_tiles,)
        cparams["dimension_semantics"] = ("parallel",)
        grid_spec = pltpu.PrefetchScalarGridSpec(
            num_scalar_prefetch=0,
            grid=grid,
            in_specs=[
                pl.BlockSpec((tm_eff, H), lambda i: (i, 0)),        # x tile
                pl.BlockSpec((H, I_pad), lambda i: (0, 0)),         # fc1 weight
                pl.BlockSpec((1, I_pad), lambda i: (0, 0)),         # fc1 bias
                pl.BlockSpec((I_pad, H), lambda i: (0, 0)),         # fc2 weight
                pl.BlockSpec((1, H), lambda i: (0, 0)),             # fc2 bias
            ],
            out_specs=pl.BlockSpec((tm_eff, H), lambda i: (i, 0)),
            scratch_shapes=[],
        )
        kernel = functools.partial(_phi_mlp_kernel_single, approximate)
    else:
        grid = (n_tok_tiles, n_k)
        cparams["dimension_semantics"] = ("parallel", "arbitrary")
        grid_spec = pltpu.PrefetchScalarGridSpec(
            num_scalar_prefetch=0,
            grid=grid,
            in_specs=[
                pl.BlockSpec((tm_eff, H), lambda i, k: (i, 0)),     # x tile
                pl.BlockSpec((H, ti_eff), lambda i, k: (0, k)),     # fc1 weight tile
                pl.BlockSpec((1, ti_eff), lambda i, k: (0, k)),     # fc1 bias tile
                pl.BlockSpec((ti_eff, H), lambda i, k: (k, 0)),     # fc2 weight tile
                pl.BlockSpec((1, H), lambda i, k: (0, 0)),          # fc2 bias
            ],
            out_specs=pl.BlockSpec((tm_eff, H), lambda i, k: (i, 0)),
            scratch_shapes=[pltpu.VMEM((tm_eff, H), jnp.float32)],
        )
        kernel = functools.partial(_phi_mlp_kernel_acc, approximate)

    out = pl.pallas_call(
        kernel,
        out_shape=jax.ShapeDtypeStruct((T_pad, H), hidden_states.dtype),
        grid_spec=grid_spec,
        compiler_params=pltpu.CompilerParams(**cparams),
        cost_estimate=cost,
    )(x, w1, b1_2d, w2, b2_2d)

    if T_pad != T:
        out = out[:T]
    return out


def phi_mlp_reference(hidden_states, w1, b1, w2, b2, *, hidden_act="gelu_new"):
    approximate = "tanh" if hidden_act in ("gelu_fast", "gelu_pytorch_tanh") else "none"
    h = hidden_states @ w1 + b1
    h = _gelu(h, approximate)
    return h @ w2 + b2


if __name__ == "__main__":
    # Small shapes consistent with the module: tokens=16, hidden=64,
    # intermediate=4*hidden=256 (Phi uses a 4x MLP expansion).
    T, H = 16, 64
    I = 4 * H
    hidden_act = "gelu_new"  # module lambda -> exact (erf) GELU

    key = jax.random.PRNGKey(0)
    kx, k1, kb1, k2, kb2 = jax.random.split(key, 5)
    x = jax.random.normal(kx, (T, H), dtype=jnp.float32)
    w1 = jax.random.normal(k1, (H, I), dtype=jnp.float32) * (1.0 / math.sqrt(H))
    b1 = jax.random.normal(kb1, (I,), dtype=jnp.float32) * 0.01
    w2 = jax.random.normal(k2, (I, H), dtype=jnp.float32) * (1.0 / math.sqrt(I))
    b2 = jax.random.normal(kb2, (H,), dtype=jnp.float32) * 0.01

    ref = phi_mlp_reference(x, w1, b1, w2, b2, hidden_act=hidden_act)

    # 1) Auto (per-chip) tiling: I=256 fits one reduction step -> the no-scratch
    #    single-step kernel path (decode-style).
    out_single = phi_mlp(x, w1, b1, w2, b2, hidden_act=hidden_act)
    out_single = jax.block_until_ready(out_single)
    assert out_single.shape == (T, H)
    assert jnp.allclose(out_single, ref, atol=1e-3, rtol=1e-3), \
        "single-step path mismatch vs reference"

    # 2) Forced ti=128 splits I=256 into 2 reduction steps, exercising the
    #    f32-accumulator path (prefill-style streaming of the weights).
    out_multi = phi_mlp(x, w1, b1, w2, b2, hidden_act=hidden_act, ti=128)
    out_multi = jax.block_until_ready(out_multi)
    assert out_multi.shape == (T, H)
    assert jnp.allclose(out_multi, ref, atol=1e-3, rtol=1e-3), \
        "multi-step (accumulator) path mismatch vs reference"

    print("KERNEL_OK")
</pallas_src>

<mosaic_0001>
module attributes {stable_mosaic.version = 11 : i64} {
  func.func @_phi_mlp_kernel_single(%arg0: i32, %arg1: memref<16x64xf32, #tpu.memory_space<vmem>>, %arg2: memref<64x256xf32, #tpu.memory_space<vmem>>, %arg3: memref<1x256xf32, #tpu.memory_space<vmem>>, %arg4: memref<256x64xf32, #tpu.memory_space<vmem>>, %arg5: memref<1x64xf32, #tpu.memory_space<vmem>>, %arg6: memref<16x64xf32, #tpu.memory_space<vmem>>) attributes {dimension_semantics = [#tpu.dimension_semantics<parallel>], iteration_bounds = array<i64: 1>, scalar_prefetch = 0 : i64, scratch_operands = 0 : i64, tpu.core_type = #tpu.core_type<tc>, window_params = [{transform_indices = @transform_0, window_bounds = array<i64: 16, 64>}, {pipeline_mode = #tpu.pipeline_mode<synchronous>, transform_indices = @transform_1, window_bounds = array<i64: 64, 256>}, {pipeline_mode = #tpu.pipeline_mode<synchronous>, transform_indices = @transform_2, window_bounds = array<i64: 1, 256>}, {pipeline_mode = #tpu.pipeline_mode<synchronous>, transform_indices = @transform_3, window_bounds = array<i64: 256, 64>}, {pipeline_mode = #tpu.pipeline_mode<synchronous>, transform_indices = @transform_4, window_bounds = array<i64: 1, 64>}, {transform_indices = @transform_5, window_bounds = array<i64: 16, 64>}]} {
    %c0 = arith.constant 0 : index
    %c0_0 = arith.constant 0 : index
    %0 = vector.load %arg1[%c0, %c0_0] : memref<16x64xf32, #tpu.memory_space<vmem>>, vector<16x64xf32>
    %c0_1 = arith.constant 0 : index
    %c0_2 = arith.constant 0 : index
    %1 = vector.load %arg2[%c0_1, %c0_2] : memref<64x256xf32, #tpu.memory_space<vmem>>, vector<64x256xf32>
    %cst = arith.constant dense<0.000000e+00> : vector<16x256xf32>
    %2 = tpu.matmul %0, %1, %cst {dimension_numbers = #tpu.dot_dimension_numbers<[1], [0], [0], [1], [0, 0, 1, 1], [], []>} : vector<16x64xf32>, vector<64x256xf32>, vector<16x256xf32> -> vector<16x256xf32>
    %c0_3 = arith.constant 0 : index
    %c0_4 = arith.constant 0 : index
    %3 = vector.load %arg3[%c0_3, %c0_4] : memref<1x256xf32, #tpu.memory_space<vmem>>, vector<1x256xf32>
    %4 = vector.broadcast %3 : vector<1x256xf32> to vector<16x256xf32>
    %5 = arith.addf %2, %4 : vector<16x256xf32>
    %cst_5 = arith.constant 5.000000e-01 : f32
    %6 = vector.broadcast %cst_5 : f32 to vector<16x256xf32>
    %7 = arith.mulf %6, %5 : vector<16x256xf32>
    %cst_6 = arith.constant 0.707106769 : f32
    %8 = vector.broadcast %cst_6 : f32 to vector<16x256xf32>
    %9 = arith.mulf %5, %8 : vector<16x256xf32>
    %10 = math.erf %9 : vector<16x256xf32>
    %cst_7 = arith.constant 1.000000e+00 : f32
    %11 = vector.broadcast %cst_7 : f32 to vector<16x256xf32>
    %12 = arith.addf %11, %10 : vector<16x256xf32>
    %13 = arith.mulf %7, %12 : vector<16x256xf32>
    %c0_8 = arith.constant 0 : index
    %c0_9 = arith.constant 0 : index
    %14 = vector.load %arg4[%c0_8, %c0_9] : memref<256x64xf32, #tpu.memory_space<vmem>>, vector<256x64xf32>
    %cst_10 = arith.constant dense<0.000000e+00> : vector<16x64xf32>
    %15 = tpu.matmul %13, %14, %cst_10 {dimension_numbers = #tpu.dot_dimension_numbers<[1], [0], [0], [1], [0, 0, 1, 1], [], []>} : vector<16x256xf32>, vector<256x64xf32>, vector<16x64xf32> -> vector<16x64xf32>
    %c0_11 = arith.constant 0 : index
    %c0_12 = arith.constant 0 : index
    %16 = vector.load %arg5[%c0_11, %c0_12] : memref<1x64xf32, #tpu.memory_space<vmem>>, vector<1x64xf32>
    %17 = vector.broadcast %16 : vector<1x64xf32> to vector<16x64xf32>
    %18 = arith.addf %15, %17 : vector<16x64xf32>
    %c0_13 = arith.constant 0 : index
    %c0_14 = arith.constant 0 : index
    %19 = vector.load %arg6[%c0_13, %c0_14] : memref<16x64xf32, #tpu.memory_space<vmem>>, vector<16x64xf32>
    tpu.vector_store %arg6[%c0_13, %c0_14], %18 {strides = array<i32>} : memref<16x64xf32, #tpu.memory_space<vmem>>, vector<16x64xf32>,
    return
  }
  func.func @transform_0(%arg0: i32) -> (i32, i32) {
    %c0_i32 = arith.constant 0 : i32
    %c0_i32_0 = arith.constant 0 : i32
    return %arg0, %c0_i32 : i32, i32
  }
  func.func @transform_1(%arg0: i32) -> (i32, i32) {
    %c0_i32 = arith.constant 0 : i32
    %c0_i32_0 = arith.constant 0 : i32
    %c0_i32_1 = arith.constant 0 : i32
    return %c0_i32, %c0_i32_0 : i32, i32
  }
  func.func @transform_2(%arg0: i32) -> (i32, i32) {
    %c0_i32 = arith.constant 0 : i32
    %c0_i32_0 = arith.constant 0 : i32
    %c0_i32_1 = arith.constant 0 : i32
    return %c0_i32, %c0_i32_0 : i32, i32
  }
  func.func @transform_3(%arg0: i32) -> (i32, i32) {
    %c0_i32 = arith.constant 0 : i32
    %c0_i32_0 = arith.constant 0 : i32
    %c0_i32_1 = arith.constant 0 : i32
    return %c0_i32, %c0_i32_0 : i32, i32
  }
  func.func @transform_4(%arg0: i32) -> (i32, i32) {
    %c0_i32 = arith.constant 0 : i32
    %c0_i32_0 = arith.constant 0 : i32
    %c0_i32_1 = arith.constant 0 : i32
    return %c0_i32, %c0_i32_0 : i32, i32
  }
  func.func @transform_5(%arg0: i32) -> (i32, i32) {
    %c0_i32 = arith.constant 0 : i32
    %c0_i32_0 = arith.constant 0 : i32
    return %arg0, %c0_i32 : i32, i32
  }
}

</mosaic_0001>

<bundles_post_ra>
// kernel: tpu_custom_call.1
= control target key start
LH: loop header
LB: loop body
LE: loop exit
PB: predicated region body
PF: predicated region fallthrough
CT: control target
= control target key end

     0   :  { %v412_v7 = vmov 0.0   ;;  %s618_s0 = inlined_call_operand.vmem [shape: f32[16,64], index: 0, kind: input, shape index: {}]   ;;  %s619_s1 = inlined_call_operand.vmem [shape: f32[64,256], index: 1, kind: input, shape index: {}]   ;;  %s620_s2 = inlined_call_operand.vmem [shape: f32[1,256], index: 2, kind: input, shape index: {}]   ;;  %s621_s3 = inlined_call_operand.vmem [shape: f32[256,64], index: 3, kind: input, shape index: {}]   ;;  %s622_s4 = inlined_call_operand.vmem [shape: f32[1,64], index: 4, kind: input, shape index: {}]   ;;  %s623_s5 = inlined_call_operand.hbm [shape: f32[16,64], index: 5, kind: output, shape index: {}]  }
   0x1   :  { %v24_v0 = vld [vmem:[%s619_s1 + $0x8] sm:$0xff]  ;;  %v26_v1 = vld [vmem:[%s619_s1 + $0x18] sm:$0xff]  ;;  %v23_v2 = vld [vmem:[%s619_s1] sm:$0xff]  ;;  %122 = vmatprep.mubr.f32.mxu0 %v412_v7 }
   0x2   :  { %v328_v3 = vpack.c.bf16 %v26_v1, %v24_v0  ;;  %v25_v4 = vld [vmem:[%s619_s1 + $0x10] sm:$0xff]  ;;  %v28_v5 = vld [vmem:[%s619_s1 + $0x28] sm:$0xff]  ;;  %v30_v6 = vld [vmem:[%s619_s1 + $0x38] sm:$0xff] }
   0x3   :  { %v330_v8 = vpack.c.bf16 %v25_v4, %v23_v2  ;;  %v332_v9 = vpack.c.bf16 %v30_v6, %v28_v5  ;;  %v27_v10 = vld [vmem:[%s619_s1 + $0x20] sm:$0xff]  ;;  %v29_v11 = vld [vmem:[%s619_s1 + $0x30] sm:$0xff]  ;;  %v32_v12 = vld [vmem:[%s619_s1 + $0x48] sm:$0xff] }
   0x4   :  { %329 = vmatprep.subr.bf16.mxu0 %v328_v3  ;;  %v34_v13 = vld [vmem:[%s619_s1 + $0x58] sm:$0xff]  ;;  %v334_v14 = vpack.c.bf16 %v29_v11, %v27_v10  ;;  %v31_v15 = vld [vmem:[%s619_s1 + $0x40] sm:$0xff]  ;;  %v33_v17 = vld [vmem:[%s619_s1 + $0x50] sm:$0xff] }
   0x5   :  { %331 = vmatpush1.bf16.msra.mxu0 %v330_v8  ;;  %v336_v16 = vpack.c.bf16 %v34_v13, %v32_v12  ;;  %v36_v18 = vld [vmem:[%s619_s1 + $0x68] sm:$0xff]  ;;  %v38_v19 = vld [vmem:[%s619_s1 + $0x78] sm:$0xff]  ;;  %v171_v20 = vld [vmem:[%s621_s3 + $0x80] sm:$0xff]  ;;  %v338_v27 = vpack.c.bf16 %v33_v17, %v31_v15 }
   0x6   :  { %333 = vmatprep.subr.bf16.mxu0 %v332_v9  ;;  %v172_v21 = vld [vmem:[%s621_s3 + $0x88] sm:$0xff]  ;;  %v155_v22 = vld [vmem:[%s621_s3] sm:$0xff]  ;;  %v173_v25 = vld [vmem:[%s621_s3 + $0x90] sm:$0xff]  ;;  %v340_v33 = vpack.c.bf16 %v38_v19, %v36_v18 }
   0x7   :  { %v344_v23 = vpack.c.bf16 %v172_v21, %v171_v20  ;;  %v156_v24 = vld [vmem:[%s621_s3 + $0x8] sm:$0xff]  ;;  %v174_v26 = vld [vmem:[%s621_s3 + $0x98] sm:$0xff]  ;;  %v157_v30 = vld [vmem:[%s621_s3 + $0x10] sm:$0xff] }
   0x8   :  { %v346_v28 = vpack.c.bf16 %v156_v24, %v155_v22  ;;  %v348_v29 = vpack.c.bf16 %v174_v26, %v173_v25  ;;  %v158_v31 = vld [vmem:[%s621_s3 + $0x18] sm:$0xff]  ;;  %v175_v32 = vld [vmem:[%s621_s3 + $0xa0] sm:$0xff]  ;;  %v37_v35 = vld [vmem:[%s619_s1 + $0x70] sm:$0xff] }
   0x9   :  { %335 = vmatpush1.bf16.msra.mxu0 %v334_v14  ;;  %v35_v34 = vld [vmem:[%s619_s1 + $0x60] sm:$0xff]  ;;  %345 = vmatprep.subr.bf16.mxu1 %v344_v23  ;;  %v176_v36 = vld [vmem:[%s621_s3 + $0xa8] sm:$0xff]  ;;  %v350_v37 = vpack.c.bf16 %v158_v31, %v157_v30 }
   0xa   :  { %337 = vmatprep.subr.bf16.mxu0 %v336_v16  ;;  %347 = vmatpush3.bf16.msra.mxu1 %v346_v28 }
   0xb   :  { %10 = vsyncpa [#allocation3], 0  ;;  %349 = vmatprep.subr.bf16.mxu1 %v348_v29  ;;  %v352_v38 = vpack.c.bf16 %v176_v36, %v175_v32  ;;  %v159_v39 = vld [vmem:[%s621_s3 + $0x20] sm:$0xff]  ;;  %v160_v40 = vld [vmem:[%s621_s3 + $0x28] sm:$0xff]  ;;  %v342_v41 = vpack.c.bf16 %v37_v35, %v35_v34  ;;  %vm51_vm0 = vcmask 523264   ;;  %v41_v11 = vlaneseq  ;;  %s413_s16 = smov [#allocation2]  }
   0xc   :  { %v354_v42 = vpack.c.bf16 %v160_v40, %v159_v39  ;;  %v21_v43 = vld [vmem:[%s618_s0] sm:$0xff]  ;;  %v22_v44 = vld [vmem:[%s618_s0 + $0x8] sm:$0xff]  ;;  %v177_v45 = vld [vmem:[%s621_s3 + $0xb0] sm:$0xff]  ;;  %s276_s17 = sshll.u32 %s413_s16, 4  ;;  %s277_s17 = int_to_ptr.vmem [resolvable:$true] %s276_s17 }
   0xd   :  { %339 = vmatpush1.bf16.msra.mxu0 %v338_v27  ;;  %v178_v46 = vld [vmem:[%s621_s3 + $0xb8] sm:$0xff]  ;;  %v161_v48 = vld [vmem:[%s621_s3 + $0x30] sm:$0xff]  ;;  %v179_v51 = vld [vmem:[%s621_s3 + $0xc0] sm:$0xff]  ;;  %v42_v12 = vshrl.u32 %v41_v11, 7  ;;  %s388_s18 = scalar_lea.vmem %s277_s17, 256  ;;  %p393_p1 = scmp.lt.s32.totalorder %s277_s17, %s277_s17 }
   0xe   :  { %341 = vmatprep.subr.bf16.mxu0 %v340_v33  ;;  %351 = vmatpush3.bf16.msra.mxu1 %v350_v37  ;;  %v356_v47 = vpack.c.bf16 %v178_v46, %v177_v45  ;;  %v162_v49 = vld [vmem:[%s621_s3 + $0x38] sm:$0xff]  ;;  %v180_v52 = vld [vmem:[%s621_s3 + $0xc8] sm:$0xff]  ;;  %v163_v54 = vld [vmem:[%s621_s3 + $0x40] sm:$0xff]  ;;  %p389_p0 = scmp.ne.s32.totalorder %s277_s17, %s388_s18  ;;  %p394_p2 = scmp.lt.s32.totalorder %s388_s18, %s388_s18 }
   0xf   :  { %353 = vmatprep.subr.bf16.mxu1 %v352_v38  ;;  %v358_v50 = vpack.c.bf16 %v162_v49, %v161_v48  ;;  %v360_v53 = vpack.c.bf16 %v180_v52, %v179_v51  ;;  %v164_v55 = vld [vmem:[%s621_s3 + $0x48] sm:$0xff]  ;;  %v181_v57 = vld [vmem:[%s621_s3 + $0xd0] sm:$0xff]  ;;  %v182_v58 = vld [vmem:[%s621_s3 + $0xd8] sm:$0xff]  ;;  %v43_v13 = vsub.s32 0, %v42_v12  ;;  %v47_v15 = vsub.s32 1, %v42_v12 }
  0x10   :  { %v362_v56 = vpack.c.bf16 %v164_v55, %v163_v54  ;;  %v364_v59 = vpack.c.bf16 %v182_v58, %v181_v57  ;;  %v165_v60 = vld [vmem:[%s621_s3 + $0x50] sm:$0xff]  ;;  %v166_v61 = vld [vmem:[%s621_s3 + $0x58] sm:$0xff]  ;;  %v183_v63 = vld [vmem:[%s621_s3 + $0xe0] sm:$0xff]  ;;  %p395_p3 = por %p394_p2, %p393_p1 }
  0x11   :  { %343 = vmatpush1.bf16.msra.mxu0 %v342_v41  ;;  %v366_v62 = vpack.c.bf16 %v166_v61, %v165_v60  ;;  %v184_v0 = vld [vmem:[%s621_s3 + $0xe8] sm:$0xff]  ;;  %v167_v2 = vld [vmem:[%s621_s3 + $0x60] sm:$0xff]  ;;  %v185_v5 = vld [vmem:[%s621_s3 + $0xf0] sm:$0xff] }
  0x12   :  { %355 = vmatpush3.bf16.msra.mxu1 %v354_v42  ;;  %v368_v1 = vpack.c.bf16 %v184_v0, %v183_v63  ;;  %v168_v3 = vld [vmem:[%s621_s3 + $0x68] sm:$0xff]  ;;  %v186_v6 = vld [vmem:[%s621_s3 + $0xf8] sm:$0xff]  ;;  %v169_v8 = vld [vmem:[%s621_s3 + $0x70] sm:$0xff]  ;;  %p396_p4 = pnand %p395_p3, %p389_p0 }
  0x13   :  { %357 = vmatprep.subr.bf16.mxu1 %v356_v47  ;;  %v370_v4 = vpack.c.bf16 %v168_v3, %v167_v2  ;;  %v170_v9 = vld [vmem:[%s621_s3 + $0x78] sm:$0xff]  ;;  %v39_v14 = vld [vmem:[%s620_s2] sm:$0x3] }
  0x14   :  { %287 = vmatmul.mubr.msk.f32.vlgmr.msra.gmra.mrb[0].mxu0 %vm51_vm0, %v21_v43  ;;  %v374_v10 = vpack.c.bf16 %v170_v9, %v169_v8  ;;  %v44_v16 = vrot.slane %v39_v14, %v43_v13  ;;  %v48_v17 = vrot.slane %v39_v14, %v47_v15  ;;  %v289_v47 = vld [vmem:[%s622_s4] ss:$0 sm:$0xff] }
  0x15   :  { %128 = vmatprep.mubr.f32.mxu0 %v412_v7  ;;  %v372_v7 = vpack.c.bf16 %v186_v6, %v185_v5 }
  0x16   :  { %359 = vmatpush3.bf16.msra.mxu1 %v358_v50 }
  0x17   :  { %361 = vmatprep.subr.bf16.mxu1 %v360_v53 }
  0x18   :  { %288 = vmatmul.mubr.msk.f32.gmra.mrb[2].mxu0 %vm51_vm0, %v22_v44 }
  0x1a   :  { %363 = vmatpush3.bf16.msra.mxu1 %v362_v56 }
  0x1b   :  { %365 = vmatprep.subr.bf16.mxu1 %v364_v59 }
  0x1e   :  { %367 = vmatpush3.bf16.msra.mxu1 %v366_v62 }
  0x1f   :  { %369 = vmatprep.subr.bf16.mxu1 %v368_v1 }
  0x22   :  { %371 = vmatpush3.bf16.msra.mxu1 %v370_v4 }
  0x23   :  { %373 = vmatprep.subr.bf16.mxu1 %v372_v7 }
  0x26   :  { %375 = vmatpush3.bf16.msra.mxu1 %v374_v10 }
  0xe7   :  { %v124_v18 = vpop.f32.mrb[0].mxu0 }
  0xe8   :  { %v125_v19 = vadd.f32 %v124_v18, %v44_v16  ;;  %v126_v20 = vpop.f32.mrb[1].mxu0 }
  0xe9   :  { %v127_v21 = vadd.f32 %v126_v20, %v48_v17 }
  0xea   :  { %v139_v22 = vmul.f32 0.70710677, %v125_v19  ;;  %v135_v35 = vmul.f32 0.5, %v125_v19 }
  0xeb   :  { %v140_v23 = vmul.f32 0.70710677, %v127_v21  ;;  %v130_v24 = vpop.f32.mrb[2].mxu0  ;;  %v136_v33 = vmul.f32 0.5, %v127_v21 }
  0xec   :  { %380 = verf.f32 %v139_v22  ;;  %v131_v25 = vadd.f32 %v130_v24, %v44_v16  ;;  %v132_v26 = vpop.f32.mrb[3].mxu0 }
  0xed   :  { %382 = verf.f32 %v140_v23  ;;  %v133_v27 = vadd.f32 %v132_v26, %v48_v17 }
  0xee   :  { %v141_v28 = vmul.f32 0.70710677, %v131_v25  ;;  %v137_v43 = vmul.f32 0.5, %v131_v25 }
  0xef   :  { %v142_v29 = vmul.f32 0.70710677, %v133_v27  ;;  %v138_v41 = vmul.f32 0.5, %v133_v27 }
  0xf0   :  { %384 = verf.f32 %v141_v28 }
  0xf1   :  { %386 = verf.f32 %v142_v29 }
  0xf6   :  { %v381_v30 = vpop.eup %380 }
  0xf7   :  { %v383_v31 = vpop.eup %382  ;;  %v147_v32 = vadd.f32 1.0, %v381_v30 }
  0xf8   :  { %v148_v34 = vadd.f32 1.0, %v383_v31 }
  0xf9   :  { %v151_v40 = vmul.f32 %v147_v32, %v135_v35 }
  0xfa   :  { %v385_v36 = vpop.eup %384  ;;  %v152_v37 = vmul.f32 %v148_v34, %v136_v33 }
  0xfb   :  { %v387_v38 = vpop.eup %386  ;;  %v149_v39 = vadd.f32 1.0, %v385_v36 }
  0xfc   :  { %v150_v42 = vadd.f32 1.0, %v387_v38  ;;  %258 = vmatprep.mubr.f32.mxu1 %v152_v37 }
  0xfd   :  { %259 = vmatmul.mubr.f32.vlgmr.msra.gmra.mrb[0].mxu1 %v151_v40  ;;  %v153_v45 = vmul.f32 %v149_v39, %v137_v43 }
  0xfe   :  { %v154_v44 = vmul.f32 %v150_v42, %v138_v41 }
 0x100   :  { %263 = vmatprep.mubr.f32.mxu1 %v154_v44 }
 0x101   :  { %264 = vmatmul.mubr.f32.gmra.mrb[2].mxu1 %v153_v45 }
 0x1d0   :  { %v322_v46 = vpop.f32.mrb[0].mxu1 }
 0x1d1   :  { %v323_v48 = vpop.f32.mrb[1].mxu1 }
 0x1d2   :  { %v324_v49 = vadd.f32 %v323_v48, %v322_v46 }
 0x1d4   :  { %v261_v50 = vadd.f32 %v324_v49, %v289_v47  ;;  %v325_v51 = vpop.f32.mrb[2].mxu1 }
 0x1d5   :  { %v326_v52 = vpop.f32.mrb[3].mxu1 }
 0x1d6   :  { %269 = vst.msk [vmem:[#allocation2] sm:$0xff] %vm51_vm0, %v261_v50  ;;  %v327_v53 = vadd.f32 %v326_v52, %v325_v51 }
 0x1d8   :  { %v266_v54 = vadd.f32 %v327_v53, %v289_v47 }
 0x1da   :  { %270 = vst.msk [vmem:[#allocation2 + $0x8] sm:$0xff] %vm51_vm0, %v266_v54 }
 0x1db   :  { %399 = shalt.err (!%p396_p4)
}
 0x1dc   :  { %s400_s20 = scalar_lea.hbm %s623_s5, 256 }
 0x1dd   :  { %p401_p5 = scmp.ne.s32.totalorder %s623_s5, %s400_s20  ;;  %p404_p6 = scmp.lt.u32.totalorder %s400_s20, %s623_s5 }
 0x1df   :  { %p406_p7 = pnand %p404_p6, %p401_p5 }
 0x1e1   :  { %409 = shalt.err (!%p406_p7)
}
 0x1e2   :  { %s414_s24 = smov 128   ;;  %s415_s25 = smov 8  }
 0x1e3   :  { %282 = dma.vmem_to_hbm [thread:$0]  %s277_s17, 256, %s623_s5, [#allocation3], %s414_s24, %s414_s24, %s415_s25  }
 0x1e4   :  { %410 = dma.done.wait [#allocation3], 256  }
 0x1e5   :  { %411 = vsyncadd [#allocation3], 4294967040 }
 0x1e6   :  { %286 = vsyncpa [#allocation3], 1 }

</bundles_post_ra>
